<compile_context>
chip_gen: v7x
topology: tpu7x:2x2x1
jax: 0.10.0
libtpu: 0.0.40
codegen_flags: <defaults>
</compile_context>

<pallas_src>
import functools

import jax
import jax.numpy as jnp
from jax import lax
from jax.experimental import pallas as pl
from jax.experimental.pallas import tpu as pltpu


def _to_template_shape_kernel(inner_t_ref, phi_ref, o_ref):
    # inner_t_ref : (C, K) f32, resident across the whole grid.
    # phi_ref     : (tv, K) tile of Phi in its native HBM layout (streamed).
    # o_ref       : (C, tv) lane-dense output tile.
    #
    # Contract over K:  out^T[c, v] = sum_k inner^T[c, k] * Phi[v, k].
    phi = phi_ref[...].astype(inner_t_ref.dtype)
    o_ref[...] = lax.dot_general(
        inner_t_ref[...],
        phi,
        dimension_numbers=(((1,), (1,)), ((), ())),
        preferred_element_type=jnp.float32,
    ).astype(o_ref.dtype)


def _pick_tile(V, desired):
    """Vertex tile: lane-dense (multiple of 128) and >=2 grid steps when possible."""
    if V <= 128:
        return V  # single full-axis block
    tv = max(128, (min(desired, V) // 128) * 128)
    if tv >= V:
        # Split into (at least) two steps so the "parallel" grid axis can be
        # sharded across v7x's two TensorCores (no-op on v5e/v6e).
        tv = max(128, ((pl.cdiv(V, 2) + 127) // 128) * 128)
    return tv


def to_template_shape(x_emb, Y_template, Phi_template, *, tv=8192,
                      phi_dtype=jnp.bfloat16):
    """x = Phi_template @ (Y_template @ x_emb), matching the PyTorch module."""
    V, K = Phi_template.shape
    K2, D = Y_template.shape
    D2, C = x_emb.shape
    assert K == K2 and D == D2

    out_dtype = x_emb.dtype

    # --- Hoisted once-per-call work (tiny; keep it out of the streaming loop).
    # (K, D) @ (D, C) -> (K, C), stored transposed (C, K): the lane-dense
    # resident LHS of the streaming matmul.  Kept in f32 for accuracy.
    inner_t = jnp.dot(Y_template, x_emb, preferred_element_type=jnp.float32).T

    # Streamed operand: Phi in its native (V, K) layout -- no HBM-materialized
    # transpose.  Optional bf16 stream halves the dominant HBM traffic; skip
    # the cast entirely if Phi is already in the streaming dtype.
    phi = Phi_template
    if phi_dtype is not None and phi.dtype != jnp.dtype(phi_dtype):
        phi = phi.astype(phi_dtype)

    tv = _pick_tile(V, tv)
    grid = (pl.cdiv(V, tv),)

    cost = pl.CostEstimate(
        flops=2 * V * K * C,
        transcendentals=0,
        bytes_accessed=(V * K * phi.dtype.itemsize
                        + C * K * 4
                        + V * C * jnp.dtype(out_dtype).itemsize),
    )

    out_t = pl.pallas_call(
        _to_template_shape_kernel,
        out_shape=jax.ShapeDtypeStruct((C, V), out_dtype),
        grid_spec=pltpu.PrefetchScalarGridSpec(
            num_scalar_prefetch=0,
            grid=grid,
            in_specs=[
                # (C, K) inner projection: same block every step -> resident.
                pl.BlockSpec((C, K), lambda i: (0, 0)),
                # Phi: stream (tv, K) tiles in native layout (contiguous in HBM
                # since each block spans all of K).
                pl.BlockSpec((tv, K), lambda i: (i, 0)),
            ],
            out_specs=pl.BlockSpec((C, tv), lambda i: (0, i)),
        ),
        compiler_params=pltpu.CompilerParams(
            # v7x: the two TensorCores split the V-axis grid; no-op on v5e/v6e.
            dimension_semantics=("parallel",),
        ),
        cost_estimate=cost,
    )(inner_t, phi)

    # Back to the module's (V, C) contract.  If the downstream consumer can
    # take (C, V) directly, return out_t instead and save ~2*V*C bytes of HBM.
    return out_t.T


if __name__ == "__main__":
    key = jax.random.PRNGKey(0)
    k1, k2, k3 = jax.random.split(key, 3)

    # Small but representative shapes:
    #   V vertices, K template spectral dim, D limit-shape basis dim, C coords.
    V, K, D, C = 1024, 64, 32, 8
    Phi_template = jax.random.normal(k1, (V, K), dtype=jnp.float32)
    Y_template = jax.random.normal(k2, (K, D), dtype=jnp.float32)
    x_emb = jax.random.normal(k3, (D, C), dtype=jnp.float32)

    # Reference (same math as the PyTorch module).
    ref = Phi_template @ (Y_template @ x_emb)

    # Exact f32 streaming path: tight tolerance.
    fn_f32 = jax.jit(functools.partial(to_template_shape, phi_dtype=None))
    out_f32 = jax.block_until_ready(fn_f32(x_emb, Y_template, Phi_template))
    assert out_f32.shape == (V, C)
    assert jnp.allclose(out_f32, ref, atol=1e-4, rtol=1e-4)

    # Default (bf16 Phi stream, f32 accumulation): bf16-level tolerance.
    fn_bf16 = jax.jit(to_template_shape)
    out_bf16 = jax.block_until_ready(fn_bf16(x_emb, Y_template, Phi_template))
    assert out_bf16.shape == (V, C)
    assert jnp.allclose(out_bf16, ref, atol=3e-1, rtol=3e-2)

    print("KERNEL_OK")
</pallas_src>

<mosaic_0001>
module attributes {stable_mosaic.version = 11 : i64} {
  func.func @_to_template_shape_kernel(%arg0: i32, %arg1: memref<8x64xf32, #tpu.memory_space<vmem>>, %arg2: memref<512x64xf32, #tpu.memory_space<vmem>>, %arg3: memref<8x512xf32, #tpu.memory_space<vmem>>) attributes {dimension_semantics = [#tpu.dimension_semantics<parallel>], iteration_bounds = array<i64: 2>, scalar_prefetch = 0 : i64, scratch_operands = 0 : i64, tpu.core_type = #tpu.core_type<tc>, window_params = [{pipeline_mode = #tpu.pipeline_mode<synchronous>, transform_indices = @transform_0, window_bounds = array<i64: 8, 64>}, {transform_indices = @transform_1, window_bounds = array<i64: 512, 64>}, {transform_indices = @transform_2, window_bounds = array<i64: 8, 512>}]} {
    %c0 = arith.constant 0 : index
    %c0_0 = arith.constant 0 : index
    %0 = vector.load %arg2[%c0, %c0_0] : memref<512x64xf32, #tpu.memory_space<vmem>>, vector<512x64xf32>
    %c0_1 = arith.constant 0 : index
    %c0_2 = arith.constant 0 : index
    %1 = vector.load %arg1[%c0_1, %c0_2] : memref<8x64xf32, #tpu.memory_space<vmem>>, vector<8x64xf32>
    %cst = arith.constant dense<0.000000e+00> : vector<8x512xf32>
    %2 = tpu.matmul %1, %0, %cst {dimension_numbers = #tpu.dot_dimension_numbers<[1], [1], [0], [0], [0, 0, 1, 0], [], []>} : vector<8x64xf32>, vector<512x64xf32>, vector<8x512xf32> -> vector<8x512xf32>
    %c0_3 = arith.constant 0 : index
    %c0_4 = arith.constant 0 : index
    %3 = vector.load %arg3[%c0_3, %c0_4] : memref<8x512xf32, #tpu.memory_space<vmem>>, vector<8x512xf32>
    tpu.vector_store %arg3[%c0_3, %c0_4], %2 {strides = array<i32>} : memref<8x512xf32, #tpu.memory_space<vmem>>, vector<8x512xf32>,
    return
  }
  func.func @transform_0(%arg0: i32) -> (i32, i32) {
    %c0_i32 = arith.constant 0 : i32
    %c0_i32_0 = arith.constant 0 : i32
    %c0_i32_1 = arith.constant 0 : i32
    return %c0_i32, %c0_i32_0 : i32, i32
  }
  func.func @transform_1(%arg0: i32) -> (i32, i32) {
    %c0_i32 = arith.constant 0 : i32
    %c0_i32_0 = arith.constant 0 : i32
    return %arg0, %c0_i32 : i32, i32
  }
  func.func @transform_2(%arg0: i32) -> (i32, i32) {
    %c0_i32 = arith.constant 0 : i32
    %c0_i32_0 = arith.constant 0 : i32
    return %c0_i32, %arg0 : i32, i32
  }
}

</mosaic_0001>

<bundles_post_ra>
// kernel: to_template_shape.1
= control target key start
LH: loop header
LB: loop body
LE: loop exit
PB: predicated region body
PF: predicated region fallthrough
CT: control target
= control target key end

     0   :  { %7 = vsyncpa [#allocation3], 0  ;;  %s1236_s0 = inlined_call_operand.vmem [shape: f32[8,64], index: 0, kind: input, shape index: {}]   ;;  %s1237_s1 = inlined_call_operand.vmem [shape: f32[1024,64], index: 1, kind: input, shape index: {}]   ;;  %s1238_s2 = inlined_call_operand.hbm [shape: f32[8,1024], index: 2, kind: output, shape index: {}]  }
   0x1   :  { %9 = vsyncpa [#allocation3 + $0x1], 0  ;;  %s988_s9 = smov 0   ;;  %s990_s10 = smov 0  }
   0x2   :  { %s992_s11 = smov 0   ;;  %s994_s12 = smov 0  }
   0x3 LB: > { %s1009_s13 = sadd.s32 4294967295, %s970_s12   ;;  %s626_s14 = sadd.s32 4294967294, %s970_s12   ;;  %s970_s12 = sphi %s994_s12, %s1246_s12   ;;  %s966_s11 = sphi %s992_s11, %s1245_s11   ;;  %s962_s10 = sphi %s990_s10, %s1244_s10   ;;  %s958_s9 = sphi %s988_s9, %s1243_s9  }
   0x4   : > { %s1013_s15 = sadd.s32 1, %s970_s12   ;;  %s69_s16 = sadd.s32 1, %s966_s11 }
   0x5   : > { %s66_s17 = ssub.s32 %s970_s12, %s1013_s15  ;;  %p79_p0 = scmp.ne.s32.totalorder %s966_s11, %s962_s10 }
   0x6   : > { %p67_p1 = scmp.eq.s32.totalorder %s66_s17, 0  ;;  %p80_p2 = scmp.eq.s32.totalorder %s1009_s13, 1 }
   0x7   : > { %p85_p3 = scmp.ne.s32.totalorder %s962_s10, %s958_s9  ;;  %p86_p4 = scmp.eq.s32.totalorder %s626_s14, 1 }
   0x8   : > { %s1024_s18 = scalar_select %p67_p1, %s966_s11, %s69_s16  }
   0x9   : > { %p1026_p5 = por %p80_p2, %p79_p0  ;;  %p1030_p6 = por %p86_p4, %p85_p3 }
   0xa   : > { %p629_p7 = scmp.ge.s32.totalorder %s970_s12, 1  ;;  %p116_p8 = scmp.lt.s32.totalorder %s970_s12, 3 }
   0xc   : > { %p117_p9 = pnand %p629_p7, %p116_p8 }
   0xd   : > { %s631_s21 = sshll.u32 (!%p117_p9), %s1009_s13, 6  ;;  %vm210_vm0 = vcmask (!%p117_p9), 523264   ;;  %v1040_v0 = vld [vmem:[%s1236_s0] sm:$0xff] (!%p117_p9)  ;;  %s135_s28 = sand.u32 (!%p117_p9), 1, %s962_s10  }
   0xe   : > { %120 = sbr.rel (%p117_p9) target bundleno = 320 (0x140), region = 28  ;;  %p139_p10 = scmp.lt.s32.totalorder (!%p117_p9), %s631_s21, 127  ;;  %737 = vmatprep.mubr.msk.f32.mxu0 (!%p117_p9), %vm210_vm0, %v1040_v0  ;;  %771 = vmatprep.mubr.msk.f32.mxu1 (!%p117_p9), %vm210_vm0, %v1040_v0  ;;  %vm1053_vm1 = vmpackc.low (!%p117_p9), %vm210_vm0, %vm210_vm0 }
   0xf   : > { %s630_s29 = sshll.u32 (!%p117_p9), %s135_s28, 5  ;;  %s704_s30 = sshll.u32 (!%p117_p9), %s1009_s13, 9 }
  0x10   : > { %s137_s3 = scalar_lea.vmem (!%p117_p9), [#allocation2], %s630_s29  ;;  %s1194_s7 = scalar_lea.hbm (!%p117_p9), %s1238_s2, %s704_s30 }
  0x11   : > { %s567_s4 = sshll.u32 (!%p117_p9), %s137_s3, 4  ;;  %s553_s8 = scalar_lea.sflag (!%p117_p9), [#allocation3], %s135_s28  ;;  %s1196_s4 = int_to_ptr.vmem [resolvable:$true] %s567_s4 }
  0x12   : > { %s908_s13 = scalar_lea.vmem (!%p117_p9), %s1196_s4, 512  ;;  %s972_s14 = smov (!%p117_p9), [#allocation2]  }
  0x13   : > { %p909_p11 = scmp.ne.s32.totalorder (!%p117_p9), %s1196_s4, %s908_s13  ;;  %s912_s16 = sshll.u32 (!%p117_p9), %s972_s14, 4  ;;  %s913_s16 = int_to_ptr.vmem [resolvable:$false] %s912_s16 }
  0x14   : > { %s914_s17 = scalar_lea.vmem (!%p117_p9), %s913_s16, 1024  ;;  %p915_p0 = scmp.lt.s32.totalorder (!%p117_p9), %s1196_s4, %s913_s16 }
  0x15   : > { %s1248_s21 = smov (!%p139_p10, %s631_s21), 127  ;;  %p910_p12 = pnand %p909_p11, %p1026_p5 }
  0x16   : > { %s632_s24 = sshll.u32 %s1248_s21, 3  ;;  %p916_p1 = scmp.lt.s32.totalorder %s914_s17, %s908_s13 }
  0x17   : > { %s1049_s27 = scalar_lea.vmem %s1237_s1, %s632_s24  ;;  %p911_p13 = pneg %p910_p12 }
  0x18   : > { %v161_v2 = vld [vmem:[%s1049_s27 + $0x80] sm:$0xff]  ;;  %v162_v3 = vld [vmem:[%s1049_s27 + $0x88] sm:$0xff]  ;;  %v163_v13 = vld [vmem:[%s1049_s27 + $0x90] sm:$0xff]  ;;  %p917_p2 = por %p916_p1, %p915_p0 }
  0x19   : > { %v193_v4 = vld [vmem:[%s1049_s27 + $0x180] sm:$0xff]  ;;  %v773_v5 = vpack.c.bf16 %v162_v3, %v161_v2  ;;  %v194_v6 = vld [vmem:[%s1049_s27 + $0x188] sm:$0xff]  ;;  %v164_v15 = vld [vmem:[%s1049_s27 + $0x98] sm:$0xff] }
  0x1a   : > { %v145_v7 = vld [vmem:[%s1049_s27] sm:$0xff]  ;;  %v146_v8 = vld [vmem:[%s1049_s27 + $0x8] sm:$0xff]  ;;  %v821_v9 = vpack.c.bf16 %v194_v6, %v193_v4  ;;  %v195_v16 = vld [vmem:[%s1049_s27 + $0x190] sm:$0xff]  ;;  %v779_v18 = vpack.c.bf16 %v164_v15, %v163_v13  ;;  %p918_p3 = pnand %p917_p2, %p911_p13 }
  0x1b   : > { %v776_v10 = vpack.c.bf16 %v146_v8, %v145_v7  ;;  %v177_v11 = vld [vmem:[%s1049_s27 + $0x100] sm:$0xff]  ;;  %v178_v12 = vld [vmem:[%s1049_s27 + $0x108] sm:$0xff]  ;;  %775 = vmatprep.subr.msk.bf16.mxu0 %vm1053_vm1, %v773_v5  ;;  %v196_v17 = vld [vmem:[%s1049_s27 + $0x198] sm:$0xff] }
  0x1c   : > { %v824_v14 = vpack.c.bf16 %v178_v12, %v177_v11  ;;  %823 = vmatprep.subr.msk.bf16.mxu1 %vm1053_vm1, %v821_v9  ;;  %v827_v19 = vpack.c.bf16 %v196_v17, %v195_v16  ;;  %v147_v20 = vld [vmem:[%s1049_s27 + $0x10] sm:$0xff]  ;;  %v148_v21 = vld [vmem:[%s1049_s27 + $0x18] sm:$0xff]  ;;  %v165_v24 = vld [vmem:[%s1049_s27 + $0xa0] sm:$0xff] }
  0x1d   : > { %778 = vmatpush3.bf16.xpose.msk.msra.mxu0 %vm1053_vm1, %v776_v10  ;;  %v179_v22 = vld [vmem:[%s1049_s27 + $0x110] sm:$0xff]  ;;  %v180_v23 = vld [vmem:[%s1049_s27 + $0x118] sm:$0xff]  ;;  %v166_v25 = vld [vmem:[%s1049_s27 + $0xa8] sm:$0xff]  ;;  %v782_v28 = vpack.c.bf16 %v148_v21, %v147_v20 }
  0x1e   : > { %826 = vmatpush3.bf16.xpose.msk.msra.mxu1 %vm1053_vm1, %v824_v14  ;;  %781 = vmatprep.subr.msk.bf16.mxu0 %vm1053_vm1, %v779_v18  ;;  %v197_v26 = vld [vmem:[%s1049_s27 + $0x1a0] sm:$0xff]  ;;  %v198_v27 = vld [vmem:[%s1049_s27 + $0x1a8] sm:$0xff]  ;;  %v830_v29 = vpack.c.bf16 %v180_v23, %v179_v22  ;;  %v785_v30 = vpack.c.bf16 %v166_v25, %v165_v24  ;;  %v167_v36 = vld [vmem:[%s1049_s27 + $0xb0] sm:$0xff] }
  0x1f   : > { %829 = vmatprep.subr.msk.bf16.mxu1 %vm1053_vm1, %v827_v19  ;;  %v833_v31 = vpack.c.bf16 %v198_v27, %v197_v26  ;;  %v149_v32 = vld [vmem:[%s1049_s27 + $0x20] sm:$0xff]  ;;  %v150_v33 = vld [vmem:[%s1049_s27 + $0x28] sm:$0xff]  ;;  %v168_v37 = vld [vmem:[%s1049_s27 + $0xb8] sm:$0xff] }
  0x20   : > { %v181_v34 = vld [vmem:[%s1049_s27 + $0x120] sm:$0xff]  ;;  %v182_v35 = vld [vmem:[%s1049_s27 + $0x128] sm:$0xff]  ;;  %v199_v38 = vld [vmem:[%s1049_s27 + $0x1b0] sm:$0xff]  ;;  %v788_v40 = vpack.c.bf16 %v150_v33, %v149_v32  ;;  %v791_v42 = vpack.c.bf16 %v168_v37, %v167_v36 }
  0x21   : > { %v200_v39 = vld [vmem:[%s1049_s27 + $0x1b8] sm:$0xff]  ;;  %v836_v41 = vpack.c.bf16 %v182_v35, %v181_v34  ;;  %v151_v44 = vld [vmem:[%s1049_s27 + $0x30] sm:$0xff]  ;;  %v169_v48 = vld [vmem:[%s1049_s27 + $0xc0] sm:$0xff] }
  0x22   : > { %v839_v43 = vpack.c.bf16 %v200_v39, %v199_v38  ;;  %v152_v45 = vld [vmem:[%s1049_s27 + $0x38] sm:$0xff]  ;;  %v183_v46 = vld [vmem:[%s1049_s27 + $0x130] sm:$0xff]  ;;  %v170_v49 = vld [vmem:[%s1049_s27 + $0xc8] sm:$0xff] }
  0x23   : > { %v184_v47 = vld [vmem:[%s1049_s27 + $0x138] sm:$0xff]  ;;  %v201_v50 = vld [vmem:[%s1049_s27 + $0x1c0] sm:$0xff]  ;;  %v202_v51 = vld [vmem:[%s1049_s27 + $0x1c8] sm:$0xff]  ;;  %v794_v52 = vpack.c.bf16 %v152_v45, %v151_v44  ;;  %v797_v54 = vpack.c.bf16 %v170_v49, %v169_v48 }
  0x24   : > { %v842_v53 = vpack.c.bf16 %v184_v47, %v183_v46  ;;  %v845_v55 = vpack.c.bf16 %v202_v51, %v201_v50  ;;  %v153_v56 = vld [vmem:[%s1049_s27 + $0x40] sm:$0xff]  ;;  %v154_v57 = vld [vmem:[%s1049_s27 + $0x48] sm:$0xff]  ;;  %v171_v60 = vld [vmem:[%s1049_s27 + $0xd0] sm:$0xff] }
  0x25   : > { %784 = vmatpush3.bf16.xpose.msk.msra.mxu0 %vm1053_vm1, %v782_v28  ;;  %v185_v58 = vld [vmem:[%s1049_s27 + $0x140] sm:$0xff]  ;;  %v186_v59 = vld [vmem:[%s1049_s27 + $0x148] sm:$0xff]  ;;  %v172_v61 = vld [vmem:[%s1049_s27 + $0xd8] sm:$0xff]  ;;  %v800_v2 = vpack.c.bf16 %v154_v57, %v153_v56 }
  0x26   : > { %832 = vmatpush3.bf16.xpose.msk.msra.mxu1 %vm1053_vm1, %v830_v29  ;;  %787 = vmatprep.subr.msk.bf16.mxu0 %vm1053_vm1, %v785_v30  ;;  %v203_v62 = vld [vmem:[%s1049_s27 + $0x1d0] sm:$0xff]  ;;  %v204_v63 = vld [vmem:[%s1049_s27 + $0x1d8] sm:$0xff]  ;;  %v848_v3 = vpack.c.bf16 %v186_v59, %v185_v58  ;;  %v803_v4 = vpack.c.bf16 %v172_v61, %v171_v60  ;;  %v173_v10 = vld [vmem:[%s1049_s27 + $0xe0] sm:$0xff] }
  0x27   : > { %835 = vmatprep.subr.msk.bf16.mxu1 %vm1053_vm1, %v833_v31  ;;  %v851_v5 = vpack.c.bf16 %v204_v63, %v203_v62  ;;  %v155_v6 = vld [vmem:[%s1049_s27 + $0x50] sm:$0xff]  ;;  %v156_v7 = vld [vmem:[%s1049_s27 + $0x58] sm:$0xff]  ;;  %v174_v11 = vld [vmem:[%s1049_s27 + $0xe8] sm:$0xff] }
  0x28   : > { %v187_v8 = vld [vmem:[%s1049_s27 + $0x150] sm:$0xff]  ;;  %v188_v9 = vld [vmem:[%s1049_s27 + $0x158] sm:$0xff]  ;;  %v205_v12 = vld [vmem:[%s1049_s27 + $0x1e0] sm:$0xff]  ;;  %v806_v14 = vpack.c.bf16 %v156_v7, %v155_v6  ;;  %v809_v16 = vpack.c.bf16 %v174_v11, %v173_v10 }
  0x29   : > { %v206_v13 = vld [vmem:[%s1049_s27 + $0x1e8] sm:$0xff]  ;;  %v854_v15 = vpack.c.bf16 %v188_v9, %v187_v8  ;;  %v157_v18 = vld [vmem:[%s1049_s27 + $0x60] sm:$0xff]  ;;  %v175_v22 = vld [vmem:[%s1049_s27 + $0xf0] sm:$0xff] }
  0x2a   : > { %v857_v17 = vpack.c.bf16 %v206_v13, %v205_v12  ;;  %v158_v19 = vld [vmem:[%s1049_s27 + $0x68] sm:$0xff]  ;;  %v189_v20 = vld [vmem:[%s1049_s27 + $0x160] sm:$0xff]  ;;  %v176_v23 = vld [vmem:[%s1049_s27 + $0xf8] sm:$0xff] }
  0x2b   : > { %v190_v21 = vld [vmem:[%s1049_s27 + $0x168] sm:$0xff]  ;;  %v207_v24 = vld [vmem:[%s1049_s27 + $0x1f0] sm:$0xff]  ;;  %v208_v25 = vld [vmem:[%s1049_s27 + $0x1f8] sm:$0xff]  ;;  %v812_v26 = vpack.c.bf16 %v158_v19, %v157_v18  ;;  %v815_v28 = vpack.c.bf16 %v176_v23, %v175_v22 }
  0x2c   : > { %v860_v27 = vpack.c.bf16 %v190_v21, %v189_v20  ;;  %v863_v29 = vpack.c.bf16 %v208_v25, %v207_v24  ;;  %v159_v30 = vld [vmem:[%s1049_s27 + $0x70] sm:$0xff]  ;;  %v160_v31 = vld [vmem:[%s1049_s27 + $0x78] sm:$0xff] }
  0x2d   : > { %790 = vmatpush3.bf16.xpose.msk.msra.mxu0 %vm1053_vm1, %v788_v40  ;;  %v191_v32 = vld [vmem:[%s1049_s27 + $0x170] sm:$0xff]  ;;  %v192_v33 = vld [vmem:[%s1049_s27 + $0x178] sm:$0xff]  ;;  %v818_v34 = vpack.c.bf16 %v160_v31, %v159_v30 }
  0x2e   : > { %838 = vmatpush3.bf16.xpose.msk.msra.mxu1 %vm1053_vm1, %v836_v41  ;;  %793 = vmatprep.subr.msk.bf16.mxu0 %vm1053_vm1, %v791_v42  ;;  %v866_v35 = vpack.c.bf16 %v192_v33, %v191_v32 }
  0x2f   : > { %841 = vmatprep.subr.msk.bf16.mxu1 %vm1053_vm1, %v839_v43 }
  0x35   : > { %796 = vmatpush3.bf16.xpose.msk.msra.mxu0 %vm1053_vm1, %v794_v52 }
  0x36   : > { %844 = vmatpush3.bf16.xpose.msk.msra.mxu1 %vm1053_vm1, %v842_v53  ;;  %799 = vmatprep.subr.msk.bf16.mxu0 %vm1053_vm1, %v797_v54 }
  0x37   : > { %847 = vmatprep.subr.msk.bf16.mxu1 %vm1053_vm1, %v845_v55 }
  0x3d   : > { %802 = vmatpush3.bf16.xpose.msk.msra.mxu0 %vm1053_vm1, %v800_v2 }
  0x3e   : > { %850 = vmatpush3.bf16.xpose.msk.msra.mxu1 %vm1053_vm1, %v848_v3  ;;  %805 = vmatprep.subr.msk.bf16.mxu0 %vm1053_vm1, %v803_v4 }
  0x3f   : > { %853 = vmatprep.subr.msk.bf16.mxu1 %vm1053_vm1, %v851_v5 }
  0x45   : > { %808 = vmatpush3.bf16.xpose.msk.msra.mxu0 %vm1053_vm1, %v806_v14 }
  0x46   : > { %856 = vmatpush3.bf16.xpose.msk.msra.mxu1 %vm1053_vm1, %v854_v15  ;;  %811 = vmatprep.subr.msk.bf16.mxu0 %vm1053_vm1, %v809_v16 }
  0x47   : > { %859 = vmatprep.subr.msk.bf16.mxu1 %vm1053_vm1, %v857_v17 }
  0x4d   : > { %814 = vmatpush3.bf16.xpose.msk.msra.mxu0 %vm1053_vm1, %v812_v26 }
  0x4e   : > { %862 = vmatpush3.bf16.xpose.msk.msra.mxu1 %vm1053_vm1, %v860_v27  ;;  %817 = vmatprep.subr.msk.bf16.mxu0 %vm1053_vm1, %v815_v28 }
  0x4f   : > { %865 = vmatprep.subr.msk.bf16.mxu1 %vm1053_vm1, %v863_v29 }
  0x55   : > { %820 = vmatpush3.bf16.xpose.msk.msra.mxu0 %vm1053_vm1, %v818_v34 }
  0x56   : > { %868 = vmatpush3.bf16.xpose.msk.msra.mxu1 %vm1053_vm1, %v866_v35 }
  0x5c   : > { %738 = vmatmul.mubr.msk.f32.vlgmr.msra.gmra.mrb[0].mxu0 %vm210_vm0, %v1040_v0 }
  0x5d   : > { %772 = vmatmul.mubr.msk.f32.vlgmr.msra.gmra.mrb[0].mxu1 %vm210_vm0, %v1040_v0 }
 0x12f   : > { %v472_v36 = vpop.f32.mrb[0].mxu0 }
 0x130   : > { %548 = vst [vmem:[%s137_s3] sm:$0xff] %v472_v36  ;;  %v543_v37 = vpop.f32.mrb[0].mxu1  ;;  %v474_v38 = vpop.f32.mrb[1].mxu0 }
 0x131   : > { %550 = vst [vmem:[%s137_s3 + $0x10] sm:$0xff] %v543_v37  ;;  %549 = vst [vmem:[%s137_s3 + $0x8] sm:$0xff] %v474_v38  ;;  %v545_v0 = vpop.f32.mrb[1].mxu1 }
 0x132   : > { %551 = vst [vmem:[%s137_s3 + $0x18] sm:$0xff] %v545_v0 }
 0x133   : > { %921 = shalt.err (!%p918_p3)
}
 0x134   : > { %s922_s21 = scalar_lea.hbm %s1194_s7, 512  ;;  %s926_s24 = scalar_lea.hbm %s1238_s2, 1024 }
 0x135   : > { %p923_p4 = scmp.ne.s32.totalorder %s1194_s7, %s922_s21  ;;  %p927_p9 = scmp.lt.u32.totalorder %s1194_s7, %s1238_s2 }
 0x136   : > { %p928_p10 = scmp.lt.u32.totalorder %s926_s24, %s922_s21  ;;  %p930_p12 = scmp.lt.u32.totalorder %s922_s21, %s1194_s7 }
 0x137   : > { %p924_p7 = pnand %p923_p4, %p1026_p5 }
 0x138   : > { %p929_p11 = por %p928_p10, %p927_p9 }
 0x139   : > { %p925_p8 = pneg %p924_p7 }
 0x13a   : > { %p931_p13 = por %p930_p12, %p929_p11 }
 0x13c   : > { %p932_p0 = pnand %p931_p13, %p925_p8 }
 0x13e   : > { %935 = shalt.err (!%p932_p0)
}
 0x13f   : > { %869 = dma.vmem_to_hbm [thread:$0]  (%p1026_p5), %s1196_s4, 512, %s1194_s7, %s553_s8  }
 0x140 PF: > { %p875_p1 = scmp.ge.s32.totalorder %s970_s12, 2  ;;  %s579_s27 = sand.u32 1, %s958_s9  }
 0x141   : > { %s580_s28 = scalar_lea.sflag [#allocation3], %s579_s27 }
 0x142   : > { %p872_p2 = pnand %p875_p1, %p1030_p6 }
 0x144   : > { %953 = dma.done.wait (!%p872_p2), %s580_s28, 512  }
 0x145   : > { %955 = vsyncadd (!%p872_p2), %s580_s28, 4294966784  ;;  %p12_p3 = scmp.ge.s32.totalorder %s1013_s15, 4   ;;  %s1243_s9 = smov %s962_s10 }
 0x146   : > { %s1244_s10 = smov %s966_s11  ;;  %s1245_s11 = smov %s1024_s18 }
 0x147   : > { %s1246_s12 = smov %s1013_s15  ;;  %14 = sbr.rel (!%p12_p3) target bundleno = 3 (0x3), region = 63 }
 0x14e   :  { %585 = vsyncpa [#allocation3], 1 }
 0x14f   :  { %587 = vsyncpa [#allocation3 + $0x1], 1 }

</bundles_post_ra>
